<compile_context>
chip_gen: v7x
topology: tpu7x:2x2x1
jax: 0.10.0
libtpu: 0.0.40
codegen_flags: <defaults>
</compile_context>

<pallas_src>
import jax
import jax.numpy as jnp
from jax.experimental import pallas as pl
from jax.experimental.pallas import tpu as pltpu


def policy_kernel(x_ref, w1_ref, b1_ref, w2_ref, b2_ref, out_ref):
    # hidden = ReLU(x @ W1 + b1)   (Dropout(p=0.6) == identity at inference)
    h = jnp.dot(x_ref[...], w1_ref[...], preferred_element_type=jnp.float32)
    h = jnp.maximum(h + b1_ref[...], 0.0)

    # logits = hidden @ W2 + b2    (all f32 — MXU has enormous slack at 16/32/8 dims)
    logits = jnp.dot(h, w2_ref[...], preferred_element_type=jnp.float32) + b2_ref[...]

    # numerically stable softmax over the last dim (exact normalization)
    m = jnp.max(logits, axis=-1, keepdims=True)
    e = jnp.exp(logits - m)
    out_ref[...] = (e / jnp.sum(e, axis=-1, keepdims=True)).astype(out_ref.dtype)


def policy_forward(x, w1, b1, w2, b2, *, tile_b=None):
    """x: [B, input_dim] f32 -> probs [B, out_dim] f32 (streamed over batch tiles)."""
    B, input_dim = x.shape
    hidden_dim = w1.shape[1]
    out_dim = w2.shape[1]

    if tile_b is None:
        # >=4 grid steps so dual-TC chips (v7x) get >=2 tiles per core and the
        # prefetch-next / writeback-prev pipeline has work to overlap; cap at 1024
        # rows (v5e/v6e HBM-roofline sweet spot, VMEM-safe everywhere even counting
        # 128-lane padding of the 16-wide x / 8-wide out blocks).
        tile_b = min(1024, max(8, (B // 4 // 8) * 8))
    tile_b = max(8, min(tile_b, ((B + 7) // 8) * 8))

    b_pad = pl.cdiv(B, tile_b) * tile_b
    if b_pad != B:
        # Padded tail rows just compute softmax(b2) and are sliced off — harmless.
        x = jnp.pad(x, ((0, b_pad - B), (0, 0)))
    num_tiles = b_pad // tile_b

    cost = pl.CostEstimate(
        flops=2 * b_pad * (input_dim * hidden_dim + hidden_dim * out_dim),
        transcendentals=b_pad * out_dim,
        bytes_accessed=(b_pad * input_dim * 4          # f32 x read
                        + b_pad * out_dim * 4          # f32 probs write
                        + (w1.size + b1.size + w2.size + b2.size) * 4),
    )

    out = pl.pallas_call(
        policy_kernel,
        out_shape=jax.ShapeDtypeStruct((b_pad, out_dim), jnp.float32),
        grid_spec=pl.GridSpec(
            grid=(num_tiles,),
            in_specs=[
                # streamed activations (double-buffered by the auto-pipeline)
                pl.BlockSpec((tile_b, input_dim), lambda i: (i, 0)),
                # weights / biases: same block every step -> resident in VMEM
                pl.BlockSpec((input_dim, hidden_dim), lambda i: (0, 0)),
                pl.BlockSpec((1, hidden_dim), lambda i: (0, 0)),
                pl.BlockSpec((hidden_dim, out_dim), lambda i: (0, 0)),
                pl.BlockSpec((1, out_dim), lambda i: (0, 0)),
            ],
            out_specs=pl.BlockSpec((tile_b, out_dim), lambda i: (i, 0)),
        ),
        compiler_params=pltpu.CompilerParams(
            dimension_semantics=("parallel",),        # shard batch tiles across TCs
            vmem_limit_bytes=32 * 1024 * 1024,        # safe on v5e/v6e/v7x
        ),
        cost_estimate=cost,
    )(x, w1, b1, w2, b2)

    return out[:B]


def init_params(key, input_dim, hidden_dim, out_dim):
    """Deterministic synthetic init (mimics nn.Linear's uniform fan-in scaling)."""
    k1, k2, k3, k4 = jax.random.split(key, 4)
    s1 = 1.0 / jnp.sqrt(input_dim)
    s2 = 1.0 / jnp.sqrt(hidden_dim)
    w1 = jax.random.uniform(k1, (input_dim, hidden_dim), jnp.float32, -s1, s1)
    b1 = jax.random.uniform(k2, (1, hidden_dim), jnp.float32, -s1, s1)
    w2 = jax.random.uniform(k3, (hidden_dim, out_dim), jnp.float32, -s2, s2)
    b2 = jax.random.uniform(k4, (1, out_dim), jnp.float32, -s2, s2)
    return w1, b1, w2, b2


if __name__ == "__main__":
    # Policy(input_dim=16, hidden_dim=32, out_dim=8); batch large enough to exercise
    # the tiled/pipelined path (4 grid steps of 256 rows) yet still tiny for a TPU.
    batch, input_dim, hidden_dim, out_dim = 1024, 16, 32, 8

    key = jax.random.PRNGKey(0)
    kx, kp = jax.random.split(key)
    x = jax.random.normal(kx, (batch, input_dim), jnp.float32)
    w1, b1, w2, b2 = init_params(kp, input_dim, hidden_dim, out_dim)

    probs = policy_forward(x, w1, b1, w2, b2)
    probs = jax.block_until_ready(probs)
    assert probs.shape == (batch, out_dim)

    # Full-f32 reference matching the original module's math (HIGHEST precision so
    # the XLA reference and the in-kernel f32 path agree tightly).
    hp = jax.lax.Precision.HIGHEST
    h_ref = jnp.maximum(jnp.dot(x, w1, precision=hp) + b1, 0.0)
    logits_ref = jnp.dot(h_ref, w2, precision=hp) + b2
    ref = jax.nn.softmax(logits_ref, axis=-1)

    assert jnp.allclose(probs, ref, atol=1e-3, rtol=1e-3)
    assert jnp.allclose(jnp.sum(probs, axis=-1), 1.0, atol=1e-4)

    print("KERNEL_OK")
</pallas_src>

<mosaic_0001>
module attributes {stable_mosaic.version = 11 : i64} {
  func.func @policy_kernel(%arg0: i32, %arg1: memref<256x16xf32, #tpu.memory_space<vmem>>, %arg2: memref<16x32xf32, #tpu.memory_space<vmem>>, %arg3: memref<1x32xf32, #tpu.memory_space<vmem>>, %arg4: memref<32x8xf32, #tpu.memory_space<vmem>>, %arg5: memref<1x8xf32, #tpu.memory_space<vmem>>, %arg6: memref<256x8xf32, #tpu.memory_space<vmem>>) attributes {dimension_semantics = [#tpu.dimension_semantics<parallel>], iteration_bounds = array<i64: 4>, scalar_prefetch = 0 : i64, scratch_operands = 0 : i64, tpu.core_type = #tpu.core_type<tc>, window_params = [{transform_indices = @transform_0, window_bounds = array<i64: 256, 16>}, {pipeline_mode = #tpu.pipeline_mode<synchronous>, transform_indices = @transform_1, window_bounds = array<i64: 16, 32>}, {pipeline_mode = #tpu.pipeline_mode<synchronous>, transform_indices = @transform_2, window_bounds = array<i64: 1, 32>}, {pipeline_mode = #tpu.pipeline_mode<synchronous>, transform_indices = @transform_3, window_bounds = array<i64: 32, 8>}, {pipeline_mode = #tpu.pipeline_mode<synchronous>, transform_indices = @transform_4, window_bounds = array<i64: 1, 8>}, {transform_indices = @transform_5, window_bounds = array<i64: 256, 8>}]} {
    %c0 = arith.constant 0 : index
    %c0_0 = arith.constant 0 : index
    %0 = vector.load %arg1[%c0, %c0_0] : memref<256x16xf32, #tpu.memory_space<vmem>>, vector<256x16xf32>
    %c0_1 = arith.constant 0 : index
    %c0_2 = arith.constant 0 : index
    %1 = vector.load %arg2[%c0_1, %c0_2] : memref<16x32xf32, #tpu.memory_space<vmem>>, vector<16x32xf32>
    %cst = arith.constant dense<0.000000e+00> : vector<256x32xf32>
    %2 = tpu.matmul %0, %1, %cst {dimension_numbers = #tpu.dot_dimension_numbers<[1], [0], [0], [1], [0, 0, 1, 1], [], []>} : vector<256x16xf32>, vector<16x32xf32>, vector<256x32xf32> -> vector<256x32xf32>
    %c0_3 = arith.constant 0 : index
    %c0_4 = arith.constant 0 : index
    %3 = vector.load %arg3[%c0_3, %c0_4] : memref<1x32xf32, #tpu.memory_space<vmem>>, vector<1x32xf32>
    %4 = vector.broadcast %3 : vector<1x32xf32> to vector<256x32xf32>
    %5 = arith.addf %2, %4 : vector<256x32xf32>
    %cst_5 = arith.constant 0.000000e+00 : f32
    %6 = vector.broadcast %cst_5 : f32 to vector<256x32xf32>
    %7 = arith.maximumf %5, %6 : vector<256x32xf32>
    %c0_6 = arith.constant 0 : index
    %c0_7 = arith.constant 0 : index
    %8 = vector.load %arg4[%c0_6, %c0_7] : memref<32x8xf32, #tpu.memory_space<vmem>>, vector<32x8xf32>
    %cst_8 = arith.constant dense<0.000000e+00> : vector<256x8xf32>
    %9 = tpu.matmul %7, %8, %cst_8 {dimension_numbers = #tpu.dot_dimension_numbers<[1], [0], [0], [1], [0, 0, 1, 1], [], []>} : vector<256x32xf32>, vector<32x8xf32>, vector<256x8xf32> -> vector<256x8xf32>
    %c0_9 = arith.constant 0 : index
    %c0_10 = arith.constant 0 : index
    %10 = vector.load %arg5[%c0_9, %c0_10] : memref<1x8xf32, #tpu.memory_space<vmem>>, vector<1x8xf32>
    %11 = vector.broadcast %10 : vector<1x8xf32> to vector<256x8xf32>
    %12 = arith.addf %9, %11 : vector<256x8xf32>
    %cst_11 = arith.constant dense<0xFF800000> : vector<256xf32>
    %13 = vector.multi_reduction <maximumf>, %12, %cst_11 [1] : vector<256x8xf32> to vector<256xf32>
    %14 = vector.shape_cast %13 : vector<256xf32> to vector<256x1xf32>
    %15 = vector.broadcast %14 : vector<256x1xf32> to vector<256x8xf32>
    %16 = arith.subf %12, %15 : vector<256x8xf32>
    %17 = math.exp %16 : vector<256x8xf32>
    %cst_12 = arith.constant dense<0.000000e+00> : vector<256xf32>
    %18 = vector.multi_reduction <add>, %17, %cst_12 [1] : vector<256x8xf32> to vector<256xf32>
    %19 = vector.shape_cast %18 : vector<256xf32> to vector<256x1xf32>
    %20 = vector.broadcast %19 : vector<256x1xf32> to vector<256x8xf32>
    %21 = arith.divf %17, %20 : vector<256x8xf32>
    %c0_13 = arith.constant 0 : index
    %c0_14 = arith.constant 0 : index
    %22 = vector.load %arg6[%c0_13, %c0_14] : memref<256x8xf32, #tpu.memory_space<vmem>>, vector<256x8xf32>
    tpu.vector_store %arg6[%c0_13, %c0_14], %21 {strides = array<i32>} : memref<256x8xf32, #tpu.memory_space<vmem>>, vector<256x8xf32>,
    return
  }
  func.func @transform_0(%arg0: i32) -> (i32, i32) {
    %c0_i32 = arith.constant 0 : i32
    %c0_i32_0 = arith.constant 0 : i32
    return %arg0, %c0_i32 : i32, i32
  }
  func.func @transform_1(%arg0: i32) -> (i32, i32) {
    %c0_i32 = arith.constant 0 : i32
    %c0_i32_0 = arith.constant 0 : i32
    %c0_i32_1 = arith.constant 0 : i32
    return %c0_i32, %c0_i32_0 : i32, i32
  }
  func.func @transform_2(%arg0: i32) -> (i32, i32) {
    %c0_i32 = arith.constant 0 : i32
    %c0_i32_0 = arith.constant 0 : i32
    %c0_i32_1 = arith.constant 0 : i32
    return %c0_i32, %c0_i32_0 : i32, i32
  }
  func.func @transform_3(%arg0: i32) -> (i32, i32) {
    %c0_i32 = arith.constant 0 : i32
    %c0_i32_0 = arith.constant 0 : i32
    %c0_i32_1 = arith.constant 0 : i32
    return %c0_i32, %c0_i32_0 : i32, i32
  }
  func.func @transform_4(%arg0: i32) -> (i32, i32) {
    %c0_i32 = arith.constant 0 : i32
    %c0_i32_0 = arith.constant 0 : i32
    %c0_i32_1 = arith.constant 0 : i32
    return %c0_i32, %c0_i32_0 : i32, i32
  }
  func.func @transform_5(%arg0: i32) -> (i32, i32) {
    %c0_i32 = arith.constant 0 : i32
    %c0_i32_0 = arith.constant 0 : i32
    return %arg0, %c0_i32 : i32, i32
  }
}

</mosaic_0001>

<bundles_post_ra>
// kernel: tpu_custom_call.1
= control target key start
LH: loop header
LB: loop body
LE: loop exit
PB: predicated region body
PF: predicated region fallthrough
CT: control target
= control target key end

     0   :  { %s1838_s18 = smov 0   ;;  %s2438_s0 = inlined_call_operand.vmem [shape: f32[1024,16], index: 0, kind: input, shape index: {}]   ;;  %s2439_s1 = inlined_call_operand.vmem [shape: f32[16,32], index: 1, kind: input, shape index: {}]   ;;  %s2440_s2 = inlined_call_operand.vmem [shape: f32[1,32], index: 2, kind: input, shape index: {}]   ;;  %s2441_s3 = inlined_call_operand.vmem [shape: f32[32,8], index: 3, kind: input, shape index: {}]   ;;  %s2442_s4 = inlined_call_operand.vmem [shape: f32[1,8], index: 4, kind: input, shape index: {}]   ;;  %s2443_s5 = inlined_call_operand.vmem [shape: f32[1024,8], index: 5, kind: output, shape index: {}]  }
   0x1 LB: > { %s1397_s19 = sadd.s32 4294967295, %s1806_s18   ;;  %p1401_p0 = scmp.ge.s32.totalorder %s1806_s18, 1  ;;  %s1806_s18 = sphi %s1838_s18, %s15_s18  }
   0x2   : > { %p188_p1 = scmp.lt.s32.totalorder %s1806_s18, 5 }
   0x4   : > { %p189_p2 = pnand %p1401_p0, %p188_p1 }
   0x5   : > { %v260_v0 = vld [vmem:[%s2439_s1] sm:$0xff] (!%p189_p2)  ;;  %v261_v1 = vld [vmem:[%s2439_s1 + $0x8] sm:$0xff] (!%p189_p2)  ;;  %s1402_s24 = sshll.u32 (!%p189_p2), %s1397_s19, 5  ;;  %vm269_vm0 = vcmask (!%p189_p2), 130048   ;;  %v625_v38 = vld [vmem:[%s2441_s3 + $0x10] sm:$0xff] (!%p189_p2)  ;;  %vm634_vm1 = vcmask (!%p189_p2), 261120  }
   0x6   : > { %192 = sbr.rel (%p189_p2) target bundleno = 830 (0x33e), region = 40  ;;  %v623_v2 = vld [vmem:[%s2441_s3] sm:$0xff] (!%p189_p2)  ;;  %v1652_v3 = vpack.c.bf16 (!%p189_p2), %v261_v1, %v260_v0  ;;  %p217_p3 = scmp.lt.s32.totalorder (!%p189_p2), %s1402_s24, 127  ;;  %v624_v4 = vld [vmem:[%s2441_s3 + $0x8] sm:$0xff] (!%p189_p2)  ;;  %v626_v39 = vld [vmem:[%s2441_s3 + $0x18] sm:$0xff] (!%p189_p2)  ;;  %vm956_vm2 = vcmask (!%p189_p2), 64512  }
   0x7   : > { %v1656_v5 = vpack.c.bf16 (!%p189_p2), %v624_v4, %v623_v2  ;;  %v1660_v40 = vpack.c.bf16 (!%p189_p2), %v626_v39, %v625_v38  ;;  %v1941_v41 = vld [vmem:[%s2440_s2] ss:$0 sm:$0xff] (!%p189_p2) }
   0x8   : > { %1653 = vmatprep.subr.bf16.mxu0 (!%p189_p2), %v1652_v3 }
   0x9   : > { %1655 = vmatpush3.bf16.msra.mxu0 (!%p189_p2), %v1652_v3  ;;  %1657 = vmatprep.subr.bf16.mxu1 (!%p189_p2), %v1656_v5 }
   0xa   : > { %1659 = vmatpush3.bf16.msra.mxu1 (!%p189_p2), %v1656_v5 }
   0xb   : > { %1661 = vmatprep.subr.bf16.mxu1 (!%p189_p2), %v1660_v40 }
   0xd   : > { %s2445_s24 = smov (!%p217_p3, %s1402_s24), 127 }
   0xe   : > { %s1403_s29 = sshll.u32 %s2445_s24, 3  ;;  %1663 = vmatpush3.bf16.msra.mxu1 %v1660_v40 }
   0xf   : > { %s1866_s7 = scalar_lea.vmem %s2438_s0, %s1403_s29  ;;  %s2337_s19 = scalar_lea.vmem %s2443_s5, %s1403_s29 }
  0x10   : > { %v228_v6 = vld [vmem:[%s1866_s7] sm:$0xff]  ;;  %v229_v7 = vld [vmem:[%s1866_s7 + $0x8] sm:$0xff]  ;;  %v230_v8 = vld [vmem:[%s1866_s7 + $0x10] sm:$0xff] }
  0x11   : > { %1548 = vmatprep.mubr.msk.f32.mxu0 %vm269_vm0, %v228_v6  ;;  %v231_v9 = vld [vmem:[%s1866_s7 + $0x18] sm:$0xff]  ;;  %v232_v10 = vld [vmem:[%s1866_s7 + $0x20] sm:$0xff]  ;;  %v233_v11 = vld [vmem:[%s1866_s7 + $0x28] sm:$0xff] }
  0x12   : > { %1549 = vmatmul.mubr.msk.f32.vlgmr.msra.gmra.mrb[0].mxu0 %vm269_vm0, %v229_v7  ;;  %v234_v12 = vld [vmem:[%s1866_s7 + $0x30] sm:$0xff]  ;;  %v235_v13 = vld [vmem:[%s1866_s7 + $0x38] sm:$0xff]  ;;  %v236_v14 = vld [vmem:[%s1866_s7 + $0x40] sm:$0xff] }
  0x13   : > { %1551 = vmatprep.mubr.msk.f32.mxu0 %vm269_vm0, %v230_v8  ;;  %v237_v15 = vld [vmem:[%s1866_s7 + $0x48] sm:$0xff]  ;;  %v238_v16 = vld [vmem:[%s1866_s7 + $0x50] sm:$0xff]  ;;  %v239_v17 = vld [vmem:[%s1866_s7 + $0x58] sm:$0xff] }
  0x14   : > { %v240_v18 = vld [vmem:[%s1866_s7 + $0x60] sm:$0xff]  ;;  %v241_v19 = vld [vmem:[%s1866_s7 + $0x68] sm:$0xff]  ;;  %v242_v20 = vld [vmem:[%s1866_s7 + $0x70] sm:$0xff] }
  0x15   : > { %v243_v21 = vld [vmem:[%s1866_s7 + $0x78] sm:$0xff]  ;;  %v244_v22 = vld [vmem:[%s1866_s7 + $0x80] sm:$0xff]  ;;  %v245_v23 = vld [vmem:[%s1866_s7 + $0x88] sm:$0xff] }
  0x16   : > { %1552 = vmatmul.mubr.msk.f32.gmra.mrb[2].mxu0 %vm269_vm0, %v231_v9  ;;  %v246_v24 = vld [vmem:[%s1866_s7 + $0x90] sm:$0xff]  ;;  %v247_v25 = vld [vmem:[%s1866_s7 + $0x98] sm:$0xff]  ;;  %v248_v26 = vld [vmem:[%s1866_s7 + $0xa0] sm:$0xff] }
  0x17   : > { %1554 = vmatprep.mubr.msk.f32.mxu0 %vm269_vm0, %v232_v10  ;;  %v249_v27 = vld [vmem:[%s1866_s7 + $0xa8] sm:$0xff]  ;;  %v250_v28 = vld [vmem:[%s1866_s7 + $0xb0] sm:$0xff]  ;;  %v251_v29 = vld [vmem:[%s1866_s7 + $0xb8] sm:$0xff] }
  0x18   : > { %v252_v30 = vld [vmem:[%s1866_s7 + $0xc0] sm:$0xff]  ;;  %v253_v31 = vld [vmem:[%s1866_s7 + $0xc8] sm:$0xff]  ;;  %v254_v32 = vld [vmem:[%s1866_s7 + $0xd0] sm:$0xff] }
  0x19   : > { %v255_v33 = vld [vmem:[%s1866_s7 + $0xd8] sm:$0xff]  ;;  %v256_v34 = vld [vmem:[%s1866_s7 + $0xe0] sm:$0xff]  ;;  %v257_v35 = vld [vmem:[%s1866_s7 + $0xe8] sm:$0xff] }
  0x1a   : > { %1555 = vmatmul.mubr.msk.f32.gmra.mrb[4].mxu0 %vm269_vm0, %v233_v11  ;;  %v258_v36 = vld [vmem:[%s1866_s7 + $0xf0] sm:$0xff]  ;;  %v259_v37 = vld [vmem:[%s1866_s7 + $0xf8] sm:$0xff] }
  0x1b   : > { %1557 = vmatprep.mubr.msk.f32.mxu0 %vm269_vm0, %v234_v12 }
  0x1e   : > { %1558 = vmatmul.mubr.msk.f32.gmra.mrb[6].mxu0 %vm269_vm0, %v235_v13 }
  0x1f   : > { %1560 = vmatprep.mubr.msk.f32.mxu0 %vm269_vm0, %v236_v14 }
  0x22   : > { %1561 = vmatmul.mubr.msk.f32.gmra.mrb[8].mxu0 %vm269_vm0, %v237_v15 }
  0x23   : > { %1563 = vmatprep.mubr.msk.f32.mxu0 %vm269_vm0, %v238_v16 }
  0x26   : > { %1564 = vmatmul.mubr.msk.f32.gmra.mrb[10].mxu0 %vm269_vm0, %v239_v17 }
  0x27   : > { %1566 = vmatprep.mubr.msk.f32.mxu0 %vm269_vm0, %v240_v18 }
  0x2a   : > { %1567 = vmatmul.mubr.msk.f32.gmra.mrb[12].mxu0 %vm269_vm0, %v241_v19 }
  0x2b   : > { %1569 = vmatprep.mubr.msk.f32.mxu0 %vm269_vm0, %v242_v20 }
  0x2e   : > { %1570 = vmatmul.mubr.msk.f32.gmra.mrb[14].mxu0 %vm269_vm0, %v243_v21 }
  0x2f   : > { %1572 = vmatprep.mubr.msk.f32.mxu0 %vm269_vm0, %v244_v22 }
  0x32   : > { %1573 = vmatmul.mubr.msk.f32.gmra.mrb[16].mxu0 %vm269_vm0, %v245_v23 }
  0x33   : > { %1575 = vmatprep.mubr.msk.f32.mxu0 %vm269_vm0, %v246_v24 }
  0x36   : > { %1576 = vmatmul.mubr.msk.f32.gmra.mrb[18].mxu0 %vm269_vm0, %v247_v25 }
  0x37   : > { %1578 = vmatprep.mubr.msk.f32.mxu0 %vm269_vm0, %v248_v26 }
  0x3a   : > { %1579 = vmatmul.mubr.msk.f32.gmra.mrb[20].mxu0 %vm269_vm0, %v249_v27 }
  0x3b   : > { %1581 = vmatprep.mubr.msk.f32.mxu0 %vm269_vm0, %v250_v28 }
  0x3e   : > { %1582 = vmatmul.mubr.msk.f32.gmra.mrb[22].mxu0 %vm269_vm0, %v251_v29 }
  0x3f   : > { %1584 = vmatprep.mubr.msk.f32.mxu0 %vm269_vm0, %v252_v30 }
  0x42   : > { %1585 = vmatmul.mubr.msk.f32.gmra.mrb[24].mxu0 %vm269_vm0, %v253_v31 }
  0x43   : > { %1587 = vmatprep.mubr.msk.f32.mxu0 %vm269_vm0, %v254_v32 }
  0x46   : > { %1588 = vmatmul.mubr.msk.f32.gmra.mrb[26].mxu0 %vm269_vm0, %v255_v33 }
  0x47   : > { %1590 = vmatprep.mubr.msk.f32.mxu0 %vm269_vm0, %v256_v34 }
  0x4a   : > { %1591 = vmatmul.mubr.msk.f32.gmra.mrb[28].mxu0 %vm269_vm0, %v257_v35 }
  0x4b   : > { %1593 = vmatprep.mubr.msk.f32.mxu0 %vm269_vm0, %v258_v36 }
  0x4e   : > { %1594 = vmatmul.mubr.msk.f32.gmra.mrb[30].mxu0 %vm269_vm0, %v259_v37 }
  0xe5   : > { %v1550_v42 = vpop.f32.mrb[0].mxu0 }
  0xe6   : > { %v438_v43 = vadd.f32 %v1550_v42, %v1941_v41  ;;  %v432_v44 = vpop.f32.mrb[1].mxu0 }
  0xe7   : > { %v433_v45 = vadd.f32 %v1941_v41, %v432_v44 }
  0xe8   : > { %v592_v48 = vmax.f32 %v438_v43, 0.0 }
  0xe9   : > { %v591_v46 = vmax.f32 %v433_v45, 0.0  ;;  %v1553_v47 = vpop.f32.mrb[2].mxu0 }
  0xea   : > { %v448_v49 = vadd.f32 %v1553_v47, %v1941_v41  ;;  %v442_v50 = vpop.f32.mrb[3].mxu0 }
  0xeb   : > { %v443_v51 = vadd.f32 %v1941_v41, %v442_v50  ;;  %1604 = vmatprep.mubr.msk.f32.mxu1 %vm634_vm1, %v591_v46 }
  0xec   : > { %1605 = vmatmul.mubr.msk.f32.vlgmr.msra.gmra.mrb[0].mxu1 %vm634_vm1, %v592_v48  ;;  %v594_v54 = vmax.f32 %v448_v49, 0.0 }
  0xed   : > { %v593_v52 = vmax.f32 %v443_v51, 0.0  ;;  %v1556_v53 = vpop.f32.mrb[4].mxu0 }
  0xee   : > { %v458_v55 = vadd.f32 %v1556_v53, %v1941_v41  ;;  %v452_v56 = vpop.f32.mrb[5].mxu0 }
  0xef   : > { %v453_v57 = vadd.f32 %v1941_v41, %v452_v56  ;;  %1607 = vmatprep.mubr.msk.f32.mxu1 %vm634_vm1, %v593_v52 }
  0xf0   : > { %v596_v58 = vmax.f32 %v458_v55, 0.0  ;;  %1608 = vmatmul.mubr.msk.f32.gmra.mrb[2].mxu1 %vm634_vm1, %v594_v54 }
  0xf1   : > { %v595_v59 = vmax.f32 %v453_v57, 0.0  ;;  %v1559_v60 = vpop.f32.mrb[6].mxu0 }
  0xf2   : > { %v468_v61 = vadd.f32 %v1559_v60, %v1941_v41  ;;  %v462_v62 = vpop.f32.mrb[7].mxu0 }
  0xf3   : > { %v463_v63 = vadd.f32 %v1941_v41, %v462_v62  ;;  %1610 = vmatprep.mubr.msk.f32.mxu1 %vm634_vm1, %v595_v59 }
  0xf4   : > { %v598_v0 = vmax.f32 %v468_v61, 0.0  ;;  %1611 = vmatmul.mubr.msk.f32.gmra.mrb[4].mxu1 %vm634_vm1, %v596_v58 }
  0xf5   : > { %v597_v1 = vmax.f32 %v463_v63, 0.0  ;;  %v1562_v2 = vpop.f32.mrb[8].mxu0 }
  0xf6   : > { %v478_v3 = vadd.f32 %v1562_v2, %v1941_v41  ;;  %v472_v4 = vpop.f32.mrb[9].mxu0 }
  0xf7   : > { %v473_v5 = vadd.f32 %v1941_v41, %v472_v4  ;;  %1613 = vmatprep.mubr.msk.f32.mxu1 %vm634_vm1, %v597_v1 }
  0xf8   : > { %v600_v6 = vmax.f32 %v478_v3, 0.0  ;;  %1614 = vmatmul.mubr.msk.f32.gmra.mrb[6].mxu1 %vm634_vm1, %v598_v0 }
  0xf9   : > { %v599_v7 = vmax.f32 %v473_v5, 0.0  ;;  %v1565_v8 = vpop.f32.mrb[10].mxu0 }
  0xfa   : > { %v488_v9 = vadd.f32 %v1565_v8, %v1941_v41  ;;  %v482_v10 = vpop.f32.mrb[11].mxu0 }
  0xfb   : > { %v483_v11 = vadd.f32 %v1941_v41, %v482_v10  ;;  %1616 = vmatprep.mubr.msk.f32.mxu1 %vm634_vm1, %v599_v7 }
  0xfc   : > { %v602_v12 = vmax.f32 %v488_v9, 0.0  ;;  %1617 = vmatmul.mubr.msk.f32.gmra.mrb[8].mxu1 %vm634_vm1, %v600_v6 }
  0xfd   : > { %v601_v13 = vmax.f32 %v483_v11, 0.0  ;;  %v1568_v14 = vpop.f32.mrb[12].mxu0  ;;  %v2010_v11 = vld [vmem:[%s2442_s4] ss:$0 sm:$0xff] }
  0xfe   : > { %v498_v15 = vadd.f32 %v1568_v14, %v1941_v41  ;;  %v492_v16 = vpop.f32.mrb[13].mxu0 }
  0xff   : > { %v493_v17 = vadd.f32 %v1941_v41, %v492_v16  ;;  %1619 = vmatprep.mubr.msk.f32.mxu1 %vm634_vm1, %v601_v13 }
 0x100   : > { %v604_v18 = vmax.f32 %v498_v15, 0.0  ;;  %1620 = vmatmul.mubr.msk.f32.gmra.mrb[10].mxu1 %vm634_vm1, %v602_v12 }
 0x101   : > { %v603_v19 = vmax.f32 %v493_v17, 0.0  ;;  %v1571_v20 = vpop.f32.mrb[14].mxu0 }
 0x102   : > { %v508_v21 = vadd.f32 %v1571_v20, %v1941_v41  ;;  %v502_v22 = vpop.f32.mrb[15].mxu0 }
 0x103   : > { %v503_v23 = vadd.f32 %v1941_v41, %v502_v22  ;;  %1622 = vmatprep.mubr.msk.f32.mxu1 %vm634_vm1, %v603_v19 }
 0x104   : > { %v606_v24 = vmax.f32 %v508_v21, 0.0  ;;  %1623 = vmatmul.mubr.msk.f32.gmra.mrb[12].mxu1 %vm634_vm1, %v604_v18 }
 0x105   : > { %v605_v25 = vmax.f32 %v503_v23, 0.0  ;;  %v1574_v26 = vpop.f32.mrb[16].mxu0 }
 0x106   : > { %v518_v27 = vadd.f32 %v1574_v26, %v1941_v41  ;;  %v512_v28 = vpop.f32.mrb[17].mxu0 }
 0x107   : > { %v513_v29 = vadd.f32 %v1941_v41, %v512_v28  ;;  %1625 = vmatprep.mubr.msk.f32.mxu1 %vm634_vm1, %v605_v25 }
 0x108   : > { %v608_v30 = vmax.f32 %v518_v27, 0.0  ;;  %1626 = vmatmul.mubr.msk.f32.gmra.mrb[14].mxu1 %vm634_vm1, %v606_v24 }
 0x109   : > { %v607_v31 = vmax.f32 %v513_v29, 0.0  ;;  %v1577_v32 = vpop.f32.mrb[18].mxu0 }
 0x10a   : > { %v528_v33 = vadd.f32 %v1577_v32, %v1941_v41  ;;  %v522_v34 = vpop.f32.mrb[19].mxu0 }
 0x10b   : > { %v523_v35 = vadd.f32 %v1941_v41, %v522_v34  ;;  %1628 = vmatprep.mubr.msk.f32.mxu1 %vm634_vm1, %v607_v31 }
 0x10c   : > { %v610_v36 = vmax.f32 %v528_v33, 0.0  ;;  %1629 = vmatmul.mubr.msk.f32.gmra.mrb[16].mxu1 %vm634_vm1, %v608_v30 }
 0x10d   : > { %v609_v37 = vmax.f32 %v523_v35, 0.0  ;;  %v1580_v38 = vpop.f32.mrb[20].mxu0 }
 0x10e   : > { %v538_v39 = vadd.f32 %v1580_v38, %v1941_v41  ;;  %v532_v40 = vpop.f32.mrb[21].mxu0 }
 0x10f   : > { %v533_v42 = vadd.f32 %v1941_v41, %v532_v40  ;;  %1631 = vmatprep.mubr.msk.f32.mxu1 %vm634_vm1, %v609_v37 }
 0x110   : > { %v612_v43 = vmax.f32 %v538_v39, 0.0  ;;  %1632 = vmatmul.mubr.msk.f32.gmra.mrb[18].mxu1 %vm634_vm1, %v610_v36 }
 0x111   : > { %v611_v44 = vmax.f32 %v533_v42, 0.0  ;;  %v1583_v45 = vpop.f32.mrb[22].mxu0 }
 0x112   : > { %v548_v46 = vadd.f32 %v1583_v45, %v1941_v41  ;;  %v542_v47 = vpop.f32.mrb[23].mxu0 }
 0x113   : > { %v543_v48 = vadd.f32 %v1941_v41, %v542_v47  ;;  %1634 = vmatprep.mubr.msk.f32.mxu1 %vm634_vm1, %v611_v44 }
 0x114   : > { %v614_v49 = vmax.f32 %v548_v46, 0.0  ;;  %1635 = vmatmul.mubr.msk.f32.gmra.mrb[20].mxu1 %vm634_vm1, %v612_v43 }
 0x115   : > { %v613_v50 = vmax.f32 %v543_v48, 0.0  ;;  %v1586_v51 = vpop.f32.mrb[24].mxu0 }
 0x116   : > { %v558_v52 = vadd.f32 %v1586_v51, %v1941_v41  ;;  %v552_v53 = vpop.f32.mrb[25].mxu0 }
 0x117   : > { %v553_v54 = vadd.f32 %v1941_v41, %v552_v53  ;;  %1637 = vmatprep.mubr.msk.f32.mxu1 %vm634_vm1, %v613_v50 }
 0x118   : > { %v616_v55 = vmax.f32 %v558_v52, 0.0  ;;  %1638 = vmatmul.mubr.msk.f32.gmra.mrb[22].mxu1 %vm634_vm1, %v614_v49 }
 0x119   : > { %v615_v56 = vmax.f32 %v553_v54, 0.0  ;;  %v1589_v57 = vpop.f32.mrb[26].mxu0 }
 0x11a   : > { %v568_v58 = vadd.f32 %v1589_v57, %v1941_v41  ;;  %v562_v59 = vpop.f32.mrb[27].mxu0 }
 0x11b   : > { %v563_v60 = vadd.f32 %v1941_v41, %v562_v59  ;;  %1640 = vmatprep.mubr.msk.f32.mxu1 %vm634_vm1, %v615_v56 }
 0x11c   : > { %v618_v61 = vmax.f32 %v568_v58, 0.0  ;;  %1641 = vmatmul.mubr.msk.f32.gmra.mrb[24].mxu1 %vm634_vm1, %v616_v55 }
 0x11d   : > { %v617_v62 = vmax.f32 %v563_v60, 0.0  ;;  %v1592_v63 = vpop.f32.mrb[28].mxu0 }
 0x11e   : > { %v578_v0 = vadd.f32 %v1592_v63, %v1941_v41  ;;  %v572_v1 = vpop.f32.mrb[29].mxu0 }
 0x11f   : > { %v573_v2 = vadd.f32 %v1941_v41, %v572_v1  ;;  %1643 = vmatprep.mubr.msk.f32.mxu1 %vm634_vm1, %v617_v62 }
 0x120   : > { %v620_v3 = vmax.f32 %v578_v0, 0.0  ;;  %1644 = vmatmul.mubr.msk.f32.gmra.mrb[26].mxu1 %vm634_vm1, %v618_v61 }
 0x121   : > { %v619_v4 = vmax.f32 %v573_v2, 0.0  ;;  %v1595_v5 = vpop.f32.mrb[30].mxu0 }
 0x122   : > { %v588_v6 = vadd.f32 %v1595_v5, %v1941_v41  ;;  %v582_v7 = vpop.f32.mrb[31].mxu0 }
 0x123   : > { %v583_v8 = vadd.f32 %v1941_v41, %v582_v7  ;;  %1646 = vmatprep.mubr.msk.f32.mxu1 %vm634_vm1, %v619_v4 }
 0x124   : > { %v622_v9 = vmax.f32 %v588_v6, 0.0  ;;  %1647 = vmatmul.mubr.msk.f32.gmra.mrb[28].mxu1 %vm634_vm1, %v620_v3 }
 0x125   : > { %v621_v10 = vmax.f32 %v583_v8, 0.0 }
 0x127   : > { %1649 = vmatprep.mubr.msk.f32.mxu1 %vm634_vm1, %v621_v10 }
 0x128   : > { %1650 = vmatmul.mubr.msk.f32.gmra.mrb[30].mxu1 %vm634_vm1, %v622_v9 }
 0x1bf   : > { %v1606_v12 = vpop.f32.mrb[0].mxu1 }
 0x1c0   : > { %v2013_v13 = vadd.f32 %v1606_v12, %v2010_v11  ;;  %v797_v41 = vpop.f32.mrb[1].mxu1 }
 0x1c1   : > { %v2016_v14 = vadd.f32 %v2010_v11, %v797_v41 }
 0x1c2   : > { %v960_v15 = vsel %vm956_vm2, %v2013_v13, -inf }
 0x1c3   : > { %961 = vmax.xlane.f32.xlu0 %v960_v15  ;;  %v1609_v16 = vpop.f32.mrb[2].mxu1  ;;  %v957_v21 = vsel %vm956_vm2, %v2016_v14, -inf }
 0x1c4   : > { %v2021_v17 = vadd.f32 %v1609_v16, %v2010_v11  ;;  %v807_v18 = vpop.f32.mrb[3].mxu1 }
 0x1c5   : > { %v2024_v19 = vadd.f32 %v2010_v11, %v807_v18 }
 0x1c6   : > { %v966_v20 = vsel %vm956_vm2, %v2021_v17, -inf }
 0x1c7   : > { %967 = vmax.xlane.f32.xlu1 %v966_v20  ;;  %v1612_v22 = vpop.f32.mrb[4].mxu1  ;;  %958 = vmax.xlane.f32.xlu0 %v957_v21  ;;  %v963_v26 = vsel %vm956_vm2, %v2024_v19, -inf }
 0x1c8   : > { %v817_v23 = vpop.f32.mrb[5].mxu1  ;;  %v2034_v25 = vadd.f32 %v1612_v22, %v2010_v11 }
 0x1c9   : > { %v2031_v24 = vadd.f32 %v2010_v11, %v817_v23 }
 0x1ca   : > { %v972_v32 = vsel %vm956_vm2, %v2034_v25, -inf }
 0x1cb   : > { %v1615_v27 = vpop.f32.mrb[6].mxu1  ;;  %964 = vmax.xlane.f32.xlu1 %v963_v26  ;;  %v969_v28 = vsel %vm956_vm2, %v2031_v24, -inf }
 0x1cc   : > { %v827_v29 = vpop.f32.mrb[7].mxu1  ;;  %970 = vmax.xlane.f32.xlu0 %v969_v28  ;;  %v2044_v31 = vadd.f32 %v1615_v27, %v2010_v11 }
 0x1cd   : > { %v2041_v30 = vadd.f32 %v2010_v11, %v827_v29 }
 0x1ce   : > { %v978_v38 = vsel %vm956_vm2, %v2044_v31, -inf }
 0x1cf   : > { %v1618_v33 = vpop.f32.mrb[8].mxu1  ;;  %973 = vmax.xlane.f32.xlu1 %v972_v32  ;;  %v975_v34 = vsel %vm956_vm2, %v2041_v30, -inf }
 0x1d0   : > { %v837_v35 = vpop.f32.mrb[9].mxu1  ;;  %976 = vmax.xlane.f32.xlu0 %v975_v34  ;;  %v2054_v37 = vadd.f32 %v1618_v33, %v2010_v11 }
 0x1d1   : > { %v2051_v36 = vadd.f32 %v2010_v11, %v837_v35 }
 0x1d2   : > { %v984_v45 = vsel %vm956_vm2, %v2054_v37, -inf }
 0x1d3   : > { %v1621_v39 = vpop.f32.mrb[10].mxu1  ;;  %979 = vmax.xlane.f32.xlu1 %v978_v38  ;;  %v981_v40 = vsel %vm956_vm2, %v2051_v36, -inf }
 0x1d4   : > { %v847_v42 = vpop.f32.mrb[11].mxu1  ;;  %982 = vmax.xlane.f32.xlu0 %v981_v40  ;;  %v2064_v44 = vadd.f32 %v1621_v39, %v2010_v11 }
 0x1d5   : > { %v2061_v43 = vadd.f32 %v2010_v11, %v847_v42 }
 0x1d6   : > { %v990_v51 = vsel %vm956_vm2, %v2064_v44, -inf }
 0x1d7   : > { %v1624_v46 = vpop.f32.mrb[12].mxu1  ;;  %985 = vmax.xlane.f32.xlu1 %v984_v45  ;;  %v987_v47 = vsel %vm956_vm2, %v2061_v43, -inf }
 0x1d8   : > { %v857_v48 = vpop.f32.mrb[13].mxu1  ;;  %988 = vmax.xlane.f32.xlu0 %v987_v47  ;;  %v2074_v50 = vadd.f32 %v1624_v46, %v2010_v11 }
 0x1d9   : > { %v2071_v49 = vadd.f32 %v2010_v11, %v857_v48 }
 0x1da   : > { %v996_v57 = vsel %vm956_vm2, %v2074_v50, -inf }
 0x1db   : > { %v1627_v52 = vpop.f32.mrb[14].mxu1  ;;  %991 = vmax.xlane.f32.xlu1 %v990_v51  ;;  %v993_v53 = vsel %vm956_vm2, %v2071_v49, -inf }
 0x1dc   : > { %v867_v54 = vpop.f32.mrb[15].mxu1  ;;  %994 = vmax.xlane.f32.xlu0 %v993_v53  ;;  %v2084_v56 = vadd.f32 %v1627_v52, %v2010_v11 }
 0x1dd   : > { %v2081_v55 = vadd.f32 %v2010_v11, %v867_v54 }
 0x1de   : > { %v1002_v63 = vsel %vm956_vm2, %v2084_v56, -inf }
 0x1df   : > { %v1630_v58 = vpop.f32.mrb[16].mxu1  ;;  %997 = vmax.xlane.f32.xlu1 %v996_v57  ;;  %v999_v59 = vsel %vm956_vm2, %v2081_v55, -inf }
 0x1e0   : > { %v877_v60 = vpop.f32.mrb[17].mxu1  ;;  %1000 = vmax.xlane.f32.xlu0 %v999_v59  ;;  %v2094_v62 = vadd.f32 %v1630_v58, %v2010_v11 }
 0x1e1   : > { %v2091_v61 = vadd.f32 %v2010_v11, %v877_v60 }
 0x1e2   : > { %v1008_v5 = vsel %vm956_vm2, %v2094_v62, -inf }
 0x1e3   : > { %v1633_v0 = vpop.f32.mrb[18].mxu1  ;;  %1003 = vmax.xlane.f32.xlu1 %v1002_v63  ;;  %v1005_v1 = vsel %vm956_vm2, %v2091_v61, -inf }
 0x1e4   : > { %v887_v2 = vpop.f32.mrb[19].mxu1  ;;  %1006 = vmax.xlane.f32.xlu0 %v1005_v1  ;;  %v2104_v4 = vadd.f32 %v1633_v0, %v2010_v11 }
 0x1e5   : > { %v2101_v3 = vadd.f32 %v2010_v11, %v887_v2 }
 0x1e6   : > { %v1014_v12 = vsel %vm956_vm2, %v2104_v4, -inf }
 0x1e7   : > { %v1636_v6 = vpop.f32.mrb[20].mxu1  ;;  %1009 = vmax.xlane.f32.xlu1 %v1008_v5  ;;  %v1011_v7 = vsel %vm956_vm2, %v2101_v3, -inf }
 0x1e8   : > { %v897_v8 = vpop.f32.mrb[21].mxu1  ;;  %1012 = vmax.xlane.f32.xlu0 %v1011_v7  ;;  %v2114_v10 = vadd.f32 %v1636_v6, %v2010_v11 }
 0x1e9   : > { %v2111_v9 = vadd.f32 %v2010_v11, %v897_v8 }
 0x1ea   : > { %v1020_v21 = vsel %vm956_vm2, %v2114_v10, -inf }
 0x1eb   : > { %v1639_v41 = vpop.f32.mrb[22].mxu1  ;;  %1015 = vmax.xlane.f32.xlu1 %v1014_v12  ;;  %v1017_v15 = vsel %vm956_vm2, %v2111_v9, -inf }
 0x1ec   : > { %v907_v16 = vpop.f32.mrb[23].mxu1  ;;  %1018 = vmax.xlane.f32.xlu0 %v1017_v15  ;;  %v2124_v20 = vadd.f32 %v1639_v41, %v2010_v11 }
 0x1ed   : > { %v2121_v18 = vadd.f32 %v2010_v11, %v907_v16 }
 0x1ee   : > { %v1026_v29 = vsel %vm956_vm2, %v2124_v20, -inf }
 0x1ef   : > { %v1642_v22 = vpop.f32.mrb[24].mxu1  ;;  %1021 = vmax.xlane.f32.xlu1 %v1020_v21  ;;  %v1023_v23 = vsel %vm956_vm2, %v2121_v18, -inf }
 0x1f0   : > { %v917_v26 = vpop.f32.mrb[25].mxu1  ;;  %1024 = vmax.xlane.f32.xlu0 %v1023_v23  ;;  %v2134_v28 = vadd.f32 %v1642_v22, %v2010_v11 }
 0x1f1   : > { %v2131_v27 = vadd.f32 %v2010_v11, %v917_v26 }
 0x1f2   : > { %v1032_v39 = vsel %vm956_vm2, %v2134_v28, -inf }
 0x1f3   : > { %v1645_v32 = vpop.f32.mrb[26].mxu1  ;;  %1027 = vmax.xlane.f32.xlu1 %v1026_v29  ;;  %v1029_v33 = vsel %vm956_vm2, %v2131_v27, -inf }
 0x1f4   : > { %v927_v34 = vpop.f32.mrb[27].mxu1  ;;  %1030 = vmax.xlane.f32.xlu0 %v1029_v33  ;;  %v2144_v38 = vadd.f32 %v1645_v32, %v2010_v11 }
 0x1f5   : > { %v2141_v35 = vadd.f32 %v2010_v11, %v927_v34 }
 0x1f6   : > { %v1038_v48 = vsel %vm956_vm2, %v2144_v38, -inf }
 0x1f7   : > { %v1648_v40 = vpop.f32.mrb[28].mxu1  ;;  %1033 = vmax.xlane.f32.xlu1 %v1032_v39  ;;  %v1035_v42 = vsel %vm956_vm2, %v2141_v35, -inf }
 0x1f8   : > { %v937_v45 = vpop.f32.mrb[29].mxu1  ;;  %1036 = vmax.xlane.f32.xlu0 %v1035_v42  ;;  %v2154_v47 = vadd.f32 %v1648_v40, %v2010_v11 }
 0x1f9   : > { %v2151_v46 = vadd.f32 %v2010_v11, %v937_v45 }
 0x1fa   : > { %v1044_v58 = vsel %vm956_vm2, %v2154_v47, -inf }
 0x1fb   : > { %v1651_v51 = vpop.f32.mrb[30].mxu1  ;;  %1039 = vmax.xlane.f32.xlu1 %v1038_v48  ;;  %v1041_v52 = vsel %vm956_vm2, %v2151_v46, -inf }
 0x1fc   : > { %v2161_v53 = vadd.f32 %v1651_v51, %v2010_v11  ;;  %v947_v54 = vpop.f32.mrb[31].mxu1  ;;  %1042 = vmax.xlane.f32.xlu0 %v1041_v52 }
 0x1fd   : > { %v2164_v57 = vadd.f32 %v2010_v11, %v947_v54 }
 0x1fe   : > { %v1050_v60 = vsel %vm956_vm2, %v2161_v53, -inf }
 0x1ff   : > { %1045 = vmax.xlane.f32.xlu1 %v1044_v58  ;;  %v1047_v59 = vsel %vm956_vm2, %v2164_v57, -inf }
 0x200   : > { %1048 = vmax.xlane.f32.xlu0 %v1047_v59 }
 0x203   : > { %1051 = vmax.xlane.f32.xlu1 %v1050_v60 }
 0x250   : > { %v962_v63 = vpop.xlane.xlu0 %961 }
 0x251   : > { %v1054_v0 = vsub.f32 %v2013_v13, %v962_v63 }
 0x253   : > { %v1087_v1 = vmul.f32 1.442695, %v1054_v0 }
 0x254   : > { %v968_v2 = vpop.xlane.xlu1 %967  ;;  %v959_v5 = vpop.xlane.xlu0 %958 }
 0x255   : > { %1672 = vpow2.f32 %v1087_v1  ;;  %v1056_v11 = vsub.f32 %v2021_v17, %v968_v2  ;;  %v1053_v6 = vsub.f32 %v2016_v14, %v959_v5 }
 0x257   : > { %v1091_v7 = vmul.f32 1.442695, %v1056_v11  ;;  %v1085_v8 = vmul.f32 1.442695, %v1053_v6 }
 0x258   : > { %v965_v12 = vpop.xlane.xlu1 %964 }
 0x259   : > { %1674 = vpow2.f32 %v1091_v7  ;;  %v1055_v41 = vsub.f32 %v2024_v19, %v965_v12  ;;  %v971_v15 = vpop.xlane.xlu0 %970 }
 0x25a   : > { %1676 = vpow2.f32 %v1085_v8  ;;  %v1057_v16 = vsub.f32 %v2031_v24, %v971_v15 }
 0x25b   : > { %v1089_v21 = vmul.f32 1.442695, %v1055_v41 }
 0x25c   : > { %v1093_v13 = vmul.f32 1.442695, %v1057_v16  ;;  %v974_v22 = vpop.xlane.xlu1 %973 }
 0x25d   : > { %1678 = vpow2.f32 %v1089_v21  ;;  %v1058_v23 = vsub.f32 %v2034_v25, %v974_v22  ;;  %v977_v26 = vpop.xlane.xlu0 %976 }
 0x25e   : > { %v1059_v17 = vsub.f32 %v2041_v30, %v977_v26  ;;  %1680 = vpow2.f32 %v1093_v13 }
 0x25f   : > { %v2179_v14 = vpop.eup %1672  ;;  %v1095_v29 = vmul.f32 1.442695, %v1058_v23 }
 0x260   : > { %v1097_v32 = vmul.f32 1.442695, %v1059_v17  ;;  %v980_v33 = vpop.xlane.xlu1 %979  ;;  %v1152_v19 = vsel %vm956_vm2, %v2179_v14, 0.0 }
 0x261   : > { %1682 = vpow2.f32 %v1095_v29  ;;  %v1060_v24 = vsub.f32 %v2044_v31, %v980_v33  ;;  %1153 = vadd.xlane.f32.xlu1 %v1152_v19  ;;  %v983_v34 = vpop.xlane.xlu0 %982 }
 0x262   : > { %v1061_v39 = vsub.f32 %v2051_v36, %v983_v34  ;;  %1684 = vpow2.f32 %v1097_v32 }
 0x263   : > { %v2185_v25 = vpop.eup %1674  ;;  %v1099_v40 = vmul.f32 1.442695, %v1060_v24 }
 0x264   : > { %v2187_v30 = vpop.eup %1676  ;;  %v1101_v42 = vmul.f32 1.442695, %v1061_v39  ;;  %v986_v45 = vpop.xlane.xlu1 %985  ;;  %v1158_v48 = vsel %vm956_vm2, %v2185_v25, 0.0 }
 0x265   : > { %1686 = vpow2.f32 %v1099_v40  ;;  %v1062_v51 = vsub.f32 %v2054_v37, %v986_v45  ;;  %1159 = vadd.xlane.f32.xlu1 %v1158_v48  ;;  %v1149_v31 = vsel %vm956_vm2, %v2187_v30, 0.0  ;;  %v989_v52 = vpop.xlane.xlu0 %988 }
 0x266   : > { %1150 = vadd.xlane.f32.xlu0 %v1149_v31  ;;  %v1063_v36 = vsub.f32 %v2061_v43, %v989_v52  ;;  %1688 = vpow2.f32 %v1101_v42 }
 0x267   : > { %v2195_v54 = vpop.eup %1678  ;;  %v1103_v58 = vmul.f32 1.442695, %v1062_v51 }
 0x268   : > { %v1105_v59 = vmul.f32 1.442695, %v1063_v36  ;;  %v992_v60 = vpop.xlane.xlu1 %991  ;;  %v1155_v63 = vsel %vm956_vm2, %v2195_v54, 0.0  ;;  %v2200_v1 = vpop.eup %1680 }
 0x269   : > { %1690 = vpow2.f32 %v1103_v58  ;;  %v1064_v37 = vsub.f32 %v2064_v44, %v992_v60  ;;  %v995_v0 = vpop.xlane.xlu0 %994  ;;  %v1161_v44 = vsel %vm956_vm2, %v2200_v1, 0.0 }
 0x26a   : > { %1156 = vadd.xlane.f32.xlu0 %v1155_v63  ;;  %v1065_v2 = vsub.f32 %v2071_v49, %v995_v0  ;;  %1692 = vpow2.f32 %v1105_v59 }
 0x26b   : > { %v2203_v5 = vpop.eup %1682  ;;  %v1107_v43 = vmul.f32 1.442695, %v1064_v37 }
 0x26c   : > { %v1109_v11 = vmul.f32 1.442695, %v1065_v2  ;;  %v998_v6 = vpop.xlane.xlu1 %997  ;;  %v1164_v7 = vsel %vm956_vm2, %v2203_v5, 0.0  ;;  %v2210_v41 = vpop.eup %1684 }
 0x26d   : > { %1694 = vpow2.f32 %v1107_v43  ;;  %v1066_v8 = vsub.f32 %v2074_v50, %v998_v6  ;;  %1165 = vadd.xlane.f32.xlu1 %v1164_v7  ;;  %v1001_v12 = vpop.xlane.xlu0 %1000  ;;  %v1167_v23 = vsel %vm956_vm2, %v2210_v41, 0.0 }
 0x26e   : > { %1162 = vadd.xlane.f32.xlu0 %v1161_v44  ;;  %v1067_v49 = vsub.f32 %v2081_v55, %v1001_v12  ;;  %1696 = vpow2.f32 %v1109_v11 }
 0x26f   : > { %v2213_v15 = vpop.eup %1686  ;;  %v1111_v16 = vmul.f32 1.442695, %v1066_v8 }
 0x270   : > { %v1113_v21 = vmul.f32 1.442695, %v1067_v49  ;;  %v1004_v13 = vpop.xlane.xlu1 %1003  ;;  %v1170_v22 = vsel %vm956_vm2, %v2213_v15, 0.0  ;;  %v2220_v17 = vpop.eup %1688 }
 0x271   : > { %1698 = vpow2.f32 %v1111_v16  ;;  %v1068_v50 = vsub.f32 %v2084_v56, %v1004_v13  ;;  %1171 = vadd.xlane.f32.xlu1 %v1170_v22  ;;  %v1007_v26 = vpop.xlane.xlu0 %1006  ;;  %v1173_v34 = vsel %vm956_vm2, %v2220_v17, 0.0 }
 0x272   : > { %1168 = vadd.xlane.f32.xlu0 %v1167_v23  ;;  %v1069_v55 = vsub.f32 %v2091_v61, %v1007_v26  ;;  %1700 = vpow2.f32 %v1113_v21 }
 0x273   : > { %v2223_v29 = vpop.eup %1690  ;;  %v1115_v32 = vmul.f32 1.442695, %v1068_v50 }
 0x274   : > { %v1117_v33 = vmul.f32 1.442695, %v1069_v55  ;;  %v1010_v19 = vpop.xlane.xlu1 %1009  ;;  %v1176_v24 = vsel %vm956_vm2, %v2223_v29, 0.0  ;;  %v2230_v40 = vpop.eup %1692 }
 0x275   : > { %1702 = vpow2.f32 %v1115_v32  ;;  %v1070_v56 = vsub.f32 %v2094_v62, %v1010_v19  ;;  %1177 = vadd.xlane.f32.xlu1 %v1176_v24  ;;  %v1013_v39 = vpop.xlane.xlu0 %1012  ;;  %v1179_v52 = vsel %vm956_vm2, %v2230_v40, 0.0 }
 0x276   : > { %1174 = vadd.xlane.f32.xlu0 %v1173_v34  ;;  %v1071_v61 = vsub.f32 %v2101_v3, %v1013_v39  ;;  %1704 = vpow2.f32 %v1117_v33 }
 0x277   : > { %v2233_v42 = vpop.eup %1694  ;;  %v1119_v45 = vmul.f32 1.442695, %v1070_v56 }
 0x278   : > { %v1121_v48 = vmul.f32 1.442695, %v1071_v61  ;;  %v1016_v51 = vpop.xlane.xlu1 %1015  ;;  %v1182_v31 = vsel %vm956_vm2, %v2233_v42, 0.0  ;;  %v2240_v58 = vpop.eup %1696 }
 0x279   : > { %1706 = vpow2.f32 %v1119_v45  ;;  %v1072_v62 = vsub.f32 %v2104_v4, %v1016_v51  ;;  %1183 = vadd.xlane.f32.xlu1 %v1182_v31  ;;  %v1019_v36 = vpop.xlane.xlu0 %1018  ;;  %v1185_v2 = vsel %vm956_vm2, %v2240_v58, 0.0 }
 0x27a   : > { %1180 = vadd.xlane.f32.xlu0 %v1179_v52  ;;  %v1073_v3 = vsub.f32 %v2111_v9, %v1019_v36  ;;  %1708 = vpow2.f32 %v1121_v48 }
 0x27b   : > { %v2243_v59 = vpop.eup %1698  ;;  %v1123_v60 = vmul.f32 1.442695, %v1072_v62 }
 0x27c   : > { %v1125_v63 = vmul.f32 1.442695, %v1073_v3  ;;  %v1022_v37 = vpop.xlane.xlu1 %1021  ;;  %v1188_v0 = vsel %vm956_vm2, %v2243_v59, 0.0  ;;  %v2250_v11 = vpop.eup %1700 }
 0x27d   : > { %1710 = vpow2.f32 %v1123_v60  ;;  %v1074_v4 = vsub.f32 %v2114_v10, %v1022_v37  ;;  %1189 = vadd.xlane.f32.xlu1 %v1188_v0  ;;  %v1025_v43 = vpop.xlane.xlu0 %1024  ;;  %v1191_v49 = vsel %vm956_vm2, %v2250_v11, 0.0 }
 0x27e   : > { %1186 = vadd.xlane.f32.xlu0 %v1185_v2  ;;  %v1075_v9 = vsub.f32 %v2121_v18, %v1025_v43  ;;  %1712 = vpow2.f32 %v1125_v63 }
 0x27f   : > { %v2253_v6 = vpop.eup %1702  ;;  %v1127_v7 = vmul.f32 1.442695, %v1074_v4 }
 0x280   : > { %v1129_v8 = vmul.f32 1.442695, %v1075_v9  ;;  %v1028_v44 = vpop.xlane.xlu1 %1027  ;;  %v1194_v12 = vsel %vm956_vm2, %v2253_v6, 0.0  ;;  %v2260_v21 = vpop.eup %1704 }
 0x281   : > { %1714 = vpow2.f32 %v1127_v7  ;;  %v1076_v10 = vsub.f32 %v2124_v20, %v1028_v44  ;;  %1195 = vadd.xlane.f32.xlu1 %v1194_v12  ;;  %v1031_v16 = vpop.xlane.xlu0 %1030  ;;  %v1197_v55 = vsel %vm956_vm2, %v2260_v21, 0.0 }
 0x282   : > { %1192 = vadd.xlane.f32.xlu0 %v1191_v49  ;;  %v1077_v18 = vsub.f32 %v2131_v27, %v1031_v16  ;;  %1716 = vpow2.f32 %v1129_v8 }
 0x283   : > { %v2263_v13 = vpop.eup %1706  ;;  %v1131_v22 = vmul.f32 1.442695, %v1076_v10 }
 0x284   : > { %v1133_v50 = vmul.f32 1.442695, %v1077_v18  ;;  %v1034_v23 = vpop.xlane.xlu1 %1033  ;;  %v1200_v26 = vsel %vm956_vm2, %v2263_v13, 0.0  ;;  %v2270_v33 = vpop.eup %1708 }
 0x285   : > { %1718 = vpow2.f32 %v1131_v22  ;;  %v1078_v20 = vsub.f32 %v2134_v28, %v1034_v23  ;;  %1201 = vadd.xlane.f32.xlu1 %v1200_v26  ;;  %v1037_v32 = vpop.xlane.xlu0 %1036  ;;  %v1203_v61 = vsel %vm956_vm2, %v2270_v33, 0.0 }
 0x286   : > { %1198 = vadd.xlane.f32.xlu0 %v1197_v55  ;;  %v1079_v27 = vsub.f32 %v2141_v35, %v1037_v32  ;;  %1720 = vpow2.f32 %v1133_v50 }
 0x287   : > { %v2273_v19 = vpop.eup %1710  ;;  %v1135_v24 = vmul.f32 1.442695, %v1078_v20 }
 0x288   : > { %v1137_v56 = vmul.f32 1.442695, %v1079_v27  ;;  %v1040_v34 = vpop.xlane.xlu1 %1039  ;;  %v1206_v39 = vsel %vm956_vm2, %v2273_v19, 0.0  ;;  %v2280_v48 = vpop.eup %1712 }
 0x289   : > { %1722 = vpow2.f32 %v1135_v24  ;;  %v1080_v28 = vsub.f32 %v2144_v38, %v1040_v34  ;;  %1207 = vadd.xlane.f32.xlu1 %v1206_v39  ;;  %v1043_v45 = vpop.xlane.xlu0 %1042  ;;  %v1209_v3 = vsel %vm956_vm2, %v2280_v48, 0.0 }
 0x28a   : > { %1204 = vadd.xlane.f32.xlu0 %v1203_v61  ;;  %v1081_v35 = vsub.f32 %v2151_v46, %v1043_v45  ;;  %1724 = vpow2.f32 %v1137_v56 }
 0x28b   : > { %v2283_v51 = vpop.eup %1714  ;;  %v1139_v31 = vmul.f32 1.442695, %v1080_v28 }
 0x28c   : > { %v1141_v62 = vmul.f32 1.442695, %v1081_v35  ;;  %v1046_v52 = vpop.xlane.xlu1 %1045  ;;  %v1212_v36 = vsel %vm956_vm2, %v2283_v51, 0.0  ;;  %v2290_v63 = vpop.eup %1716 }
 0x28d   : > { %1726 = vpow2.f32 %v1139_v31  ;;  %v1082_v38 = vsub.f32 %v2154_v47, %v1046_v52  ;;  %1213 = vadd.xlane.f32.xlu1 %v1212_v36  ;;  %v1049_v60 = vpop.xlane.xlu0 %1048  ;;  %v1215_v9 = vsel %vm956_vm2, %v2290_v63, 0.0 }
 0x28e   : > { %1210 = vadd.xlane.f32.xlu0 %v1209_v3  ;;  %v1083_v46 = vsub.f32 %v2164_v57, %v1049_v60  ;;  %1728 = vpow2.f32 %v1141_v62 }
 0x28f   : > { %v2293_v37 = vpop.eup %1718  ;;  %v1143_v0 = vmul.f32 1.442695, %v1082_v38 }
 0x290   : > { %v1145_v4 = vmul.f32 1.442695, %v1083_v46  ;;  %v1052_v2 = vpop.xlane.xlu1 %1051  ;;  %v1218_v43 = vsel %vm956_vm2, %v2293_v37, 0.0  ;;  %v2300_v7 = vpop.eup %1720 }
 0x291   : > { %1730 = vpow2.f32 %v1143_v0  ;;  %v1084_v47 = vsub.f32 %v2161_v53, %v1052_v2  ;;  %1219 = vadd.xlane.f32.xlu1 %v1218_v43  ;;  %v1221_v12 = vsel %vm956_vm2, %v2300_v7, 0.0 }
 0x292   : > { %1216 = vadd.xlane.f32.xlu0 %v1215_v9  ;;  %1732 = vpow2.f32 %v1145_v4 }
 0x293   : > { %v2302_v57 = vpop.eup %1722  ;;  %v1147_v8 = vmul.f32 1.442695, %v1084_v47 }
 0x294   : > { %v1224_v44 = vsel %vm956_vm2, %v2302_v57, 0.0  ;;  %v2308_v53 = vpop.eup %1724 }
 0x295   : > { %1734 = vpow2.f32 %v1147_v8  ;;  %1225 = vadd.xlane.f32.xlu1 %v1224_v44  ;;  %v1227_v16 = vsel %vm956_vm2, %v2308_v53, 0.0 }
 0x296   : > { %1222 = vadd.xlane.f32.xlu0 %v1221_v12 }
 0x297   : > { %v2310_v10 = vpop.eup %1726 }
 0x298   : > { %v1230_v49 = vsel %vm956_vm2, %v2310_v10, 0.0  ;;  %v2316_v18 = vpop.eup %1728 }
 0x299   : > { %1231 = vadd.xlane.f32.xlu1 %v1230_v49  ;;  %v1233_v23 = vsel %vm956_vm2, %v2316_v18, 0.0 }
 0x29a   : > { %1228 = vadd.xlane.f32.xlu0 %v1227_v16 }
 0x29b   : > { %v2318_v22 = vpop.eup %1730 }
 0x29c   : > { %v1236_v50 = vsel %vm956_vm2, %v2318_v22, 0.0  ;;  %v2324_v26 = vpop.eup %1732 }
 0x29d   : > { %1237 = vadd.xlane.f32.xlu1 %v1236_v50  ;;  %v1239_v32 = vsel %vm956_vm2, %v2324_v26, 0.0 }
 0x29e   : > { %1234 = vadd.xlane.f32.xlu0 %v1233_v23 }
 0x29f   : > { %v2326_v20 = vpop.eup %1734 }
 0x2a0   : > { %v1242_v55 = vsel %vm956_vm2, %v2326_v20, 0.0 }
 0x2a1   : > { %1243 = vadd.xlane.f32.xlu1 %v1242_v55 }
 0x2a2   : > { %1240 = vadd.xlane.f32.xlu0 %v1239_v32 }
 0x2ee   : > { %v1154_v27 = vpop.xlane.xlu1 %1153 }
 0x2ef   : > { %1736 = vrcp.f32 %v1154_v27 }
 0x2f2   : > { %v1160_v24 = vpop.xlane.xlu1 %1159 }
 0x2f3   : > { %1738 = vrcp.f32 %v1160_v24  ;;  %v1151_v56 = vpop.xlane.xlu0 %1150 }
 0x2f4   : > { %1740 = vrcp.f32 %v1151_v56 }
 0x2f7   : > { %v1157_v34 = vpop.xlane.xlu0 %1156 }
 0x2f8   : > { %1742 = vrcp.f32 %v1157_v34 }
 0x2f9   : > { %v1737_v39 = vpop.eup %1736 }
 0x2fa   : > { %v1248_v28 = vmul.f32 %v1737_v39, %v2179_v14  ;;  %v1166_v61 = vpop.xlane.xlu1 %1165 }
 0x2fb   : > { %1744 = vrcp.f32 %v1166_v61  ;;  %v1163_v45 = vpop.xlane.xlu0 %1162 }
 0x2fc   : > { %1310 = vst.msk [vmem:[%s2337_s19 + $0x8] sm:$0xff] %vm956_vm2, %v1248_v28  ;;  %1746 = vrcp.f32 %v1163_v45 }
 0x2fd   : > { %v1739_v35 = vpop.eup %1738 }
 0x2fe   : > { %v1741_v31 = vpop.eup %1740  ;;  %v1252_v62 = vmul.f32 %v1739_v35, %v2185_v25  ;;  %v1172_v52 = vpop.xlane.xlu1 %1171 }
 0x2ff   : > { %v1246_v36 = vmul.f32 %v1741_v31, %v2187_v30  ;;  %1748 = vrcp.f32 %v1172_v52  ;;  %v1169_v38 = vpop.xlane.xlu0 %1168 }
 0x300   : > { %1312 = vst.msk [vmem:[%s2337_s19 + $0x18] sm:$0xff] %vm956_vm2, %v1252_v62  ;;  %1750 = vrcp.f32 %v1169_v38 }
 0x301   : > { %1309 = vst.msk [vmem:[%s2337_s19] sm:$0xff] %vm956_vm2, %v1246_v36 }
 0x302   : > { %v1743_v14 = vpop.eup %1742  ;;  %v1178_v3 = vpop.xlane.xlu1 %1177 }
 0x303   : > { %v1250_v60 = vmul.f32 %v1743_v14, %v2195_v54  ;;  %1752 = vrcp.f32 %v1178_v3  ;;  %v1175_v46 = vpop.xlane.xlu0 %1174 }
 0x304   : > { %1754 = vrcp.f32 %v1175_v46 }
 0x305   : > { %v1745_v25 = vpop.eup %1744  ;;  %1311 = vst.msk [vmem:[%s2337_s19 + $0x10] sm:$0xff] %vm956_vm2, %v1250_v60 }
 0x306   : > { %v1747_v30 = vpop.eup %1746  ;;  %v1256_v0 = vmul.f32 %v1745_v25, %v2203_v5  ;;  %v1184_v4 = vpop.xlane.xlu1 %1183 }
 0x307   : > { %v1254_v2 = vmul.f32 %v1747_v30, %v2200_v1  ;;  %1756 = vrcp.f32 %v1184_v4  ;;  %v1181_v43 = vpop.xlane.xlu0 %1180 }
 0x308   : > { %1314 = vst.msk [vmem:[%s2337_s19 + $0x28] sm:$0xff] %vm956_vm2, %v1256_v0  ;;  %1758 = vrcp.f32 %v1181_v43 }
 0x309   : > { %v1749_v54 = vpop.eup %1748  ;;  %1313 = vst.msk [vmem:[%s2337_s19 + $0x20] sm:$0xff] %vm956_vm2, %v1254_v2 }
 0x30a   : > { %v1751_v47 = vpop.eup %1750  ;;  %v1260_v9 = vmul.f32 %v1749_v54, %v2213_v15  ;;  %v1190_v8 = vpop.xlane.xlu1 %1189 }
 0x30b   : > { %v1258_v44 = vmul.f32 %v1751_v47, %v2210_v41  ;;  %1760 = vrcp.f32 %v1190_v8  ;;  %v1187_v5 = vpop.xlane.xlu0 %1186 }
 0x30c   : > { %1316 = vst.msk [vmem:[%s2337_s19 + $0x38] sm:$0xff] %vm956_vm2, %v1260_v9  ;;  %1762 = vrcp.f32 %v1187_v5 }
 0x30d   : > { %v1753_v1 = vpop.eup %1752  ;;  %1315 = vst.msk [vmem:[%s2337_s19 + $0x30] sm:$0xff] %vm956_vm2, %v1258_v44 }
 0x30e   : > { %v1755_v12 = vpop.eup %1754  ;;  %v1264_v49 = vmul.f32 %v1753_v1, %v2223_v29  ;;  %v1196_v16 = vpop.xlane.xlu1 %1195 }
 0x30f   : > { %v1262_v50 = vmul.f32 %v1755_v12, %v2220_v17  ;;  %1764 = vrcp.f32 %v1196_v16  ;;  %v1193_v15 = vpop.xlane.xlu0 %1192 }
 0x310   : > { %1318 = vst.msk [vmem:[%s2337_s19 + $0x48] sm:$0xff] %vm956_vm2, %v1264_v49  ;;  %1766 = vrcp.f32 %v1193_v15 }
 0x311   : > { %v1757_v41 = vpop.eup %1756  ;;  %1317 = vst.msk [vmem:[%s2337_s19 + $0x40] sm:$0xff] %vm956_vm2, %v1262_v50 }
 0x312   : > { %v1759_v23 = vpop.eup %1758  ;;  %v1268_v55 = vmul.f32 %v1757_v41, %v2233_v42  ;;  %v1202_v32 = vpop.xlane.xlu1 %1201 }
 0x313   : > { %v1266_v27 = vmul.f32 %v1759_v23, %v2230_v40  ;;  %1768 = vrcp.f32 %v1202_v32  ;;  %v1199_v29 = vpop.xlane.xlu0 %1198 }
 0x314   : > { %1320 = vst.msk [vmem:[%s2337_s19 + $0x58] sm:$0xff] %vm956_vm2, %v1268_v55  ;;  %1770 = vrcp.f32 %v1199_v29 }
 0x315   : > { %v1761_v17 = vpop.eup %1760  ;;  %1319 = vst.msk [vmem:[%s2337_s19 + $0x50] sm:$0xff] %vm956_vm2, %v1266_v27 }
 0x316   : > { %v1763_v24 = vpop.eup %1762  ;;  %v1272_v56 = vmul.f32 %v1761_v17, %v2243_v59  ;;  %v1208_v34 = vpop.xlane.xlu1 %1207 }
 0x317   : > { %v1270_v39 = vmul.f32 %v1763_v24, %v2240_v58  ;;  %1772 = vrcp.f32 %v1208_v34  ;;  %v1205_v42 = vpop.xlane.xlu0 %1204 }
 0x318   : > { %1322 = vst.msk [vmem:[%s2337_s19 + $0x68] sm:$0xff] %vm956_vm2, %v1272_v56  ;;  %1774 = vrcp.f32 %v1205_v42 }
 0x319   : > { %v1765_v40 = vpop.eup %1764  ;;  %1321 = vst.msk [vmem:[%s2337_s19 + $0x60] sm:$0xff] %vm956_vm2, %v1270_v39 }
 0x31a   : > { %v1767_v28 = vpop.eup %1766  ;;  %v1276_v61 = vmul.f32 %v1765_v40, %v2253_v6  ;;  %v1214_v45 = vpop.xlane.xlu1 %1213 }
 0x31b   : > { %v1274_v35 = vmul.f32 %v1767_v28, %v2250_v11  ;;  %1776 = vrcp.f32 %v1214_v45  ;;  %v1211_v59 = vpop.xlane.xlu0 %1210 }
 0x31c   : > { %1324 = vst.msk [vmem:[%s2337_s19 + $0x78] sm:$0xff] %vm956_vm2, %v1276_v61  ;;  %1778 = vrcp.f32 %v1211_v59 }
 0x31d   : > { %v1769_v58 = vpop.eup %1768  ;;  %1323 = vst.msk [vmem:[%s2337_s19 + $0x70] sm:$0xff] %vm956_vm2, %v1274_v35 }
 0x31e   : > { %v1771_v31 = vpop.eup %1770  ;;  %v1280_v62 = vmul.f32 %v1769_v58, %v2263_v13  ;;  %v1220_v52 = vpop.xlane.xlu1 %1219 }
 0x31f   : > { %v1278_v36 = vmul.f32 %v1771_v31, %v2260_v21  ;;  %1780 = vrcp.f32 %v1220_v52  ;;  %v1217_v6 = vpop.xlane.xlu0 %1216 }
 0x320   : > { %1326 = vst.msk [vmem:[%s2337_s19 + $0x88] sm:$0xff] %vm956_vm2, %v1280_v62  ;;  %1782 = vrcp.f32 %v1217_v6 }
 0x321   : > { %v1773_v11 = vpop.eup %1772  ;;  %1325 = vst.msk [vmem:[%s2337_s19 + $0x80] sm:$0xff] %vm956_vm2, %v1278_v36 }
 0x322   : > { %v1775_v38 = vpop.eup %1774  ;;  %v1284_v14 = vmul.f32 %v1773_v11, %v2273_v19  ;;  %v1226_v3 = vpop.xlane.xlu1 %1225 }
 0x323   : > { %v1282_v60 = vmul.f32 %v1775_v38, %v2270_v33  ;;  %1784 = vrcp.f32 %v1226_v3  ;;  %v1223_v13 = vpop.xlane.xlu0 %1222 }
 0x324   : > { %1328 = vst.msk [vmem:[%s2337_s19 + $0x98] sm:$0xff] %vm956_vm2, %v1284_v14  ;;  %1786 = vrcp.f32 %v1223_v13 }
 0x325   : > { %v1777_v21 = vpop.eup %1776  ;;  %1327 = vst.msk [vmem:[%s2337_s19 + $0x90] sm:$0xff] %vm956_vm2, %v1282_v60 }
 0x326   : > { %v1779_v46 = vpop.eup %1778  ;;  %v1288_v25 = vmul.f32 %v1777_v21, %v2283_v51  ;;  %v1232_v30 = vpop.xlane.xlu1 %1231 }
 0x327   : > { %v1286_v0 = vmul.f32 %v1779_v46, %v2280_v48  ;;  %1788 = vrcp.f32 %v1232_v30  ;;  %v1229_v19 = vpop.xlane.xlu0 %1228 }
 0x328   : > { %1330 = vst.msk [vmem:[%s2337_s19 + $0xa8] sm:$0xff] %vm956_vm2, %v1288_v25  ;;  %1790 = vrcp.f32 %v1229_v19 }
 0x329   : > { %v1781_v33 = vpop.eup %1780  ;;  %1329 = vst.msk [vmem:[%s2337_s19 + $0xa0] sm:$0xff] %vm956_vm2, %v1286_v0 }
 0x32a   : > { %v1783_v4 = vpop.eup %1782  ;;  %v1292_v2 = vmul.f32 %v1781_v33, %v2293_v37  ;;  %v1238_v43 = vpop.xlane.xlu1 %1237 }
 0x32b   : > { %v1290_v54 = vmul.f32 %v1783_v4, %v2290_v63  ;;  %1792 = vrcp.f32 %v1238_v43  ;;  %v1235_v51 = vpop.xlane.xlu0 %1234 }
 0x32c   : > { %1332 = vst.msk [vmem:[%s2337_s19 + $0xb8] sm:$0xff] %vm956_vm2, %v1292_v2  ;;  %1794 = vrcp.f32 %v1235_v51 }
 0x32d   : > { %v1785_v48 = vpop.eup %1784  ;;  %1331 = vst.msk [vmem:[%s2337_s19 + $0xb0] sm:$0xff] %vm956_vm2, %v1290_v54 }
 0x32e   : > { %v1787_v47 = vpop.eup %1786  ;;  %v1296_v9 = vmul.f32 %v1785_v48, %v2302_v57  ;;  %v1244_v8 = vpop.xlane.xlu1 %1243 }
 0x32f   : > { %v1294_v37 = vmul.f32 %v1787_v47, %v2300_v7  ;;  %1796 = vrcp.f32 %v1244_v8  ;;  %v1241_v63 = vpop.xlane.xlu0 %1240 }
 0x330   : > { %1334 = vst.msk [vmem:[%s2337_s19 + $0xc8] sm:$0xff] %vm956_vm2, %v1296_v9  ;;  %1798 = vrcp.f32 %v1241_v63 }
 0x331   : > { %v1789_v44 = vpop.eup %1788  ;;  %1333 = vst.msk [vmem:[%s2337_s19 + $0xc0] sm:$0xff] %vm956_vm2, %v1294_v37 }
 0x332   : > { %v1791_v5 = vpop.eup %1790  ;;  %v1300_v1 = vmul.f32 %v1789_v44, %v2310_v10 }
 0x333   : > { %v1298_v57 = vmul.f32 %v1791_v5, %v2308_v53 }
 0x334   : > { %1336 = vst.msk [vmem:[%s2337_s19 + $0xd8] sm:$0xff] %vm956_vm2, %v1300_v1 }
 0x335   : > { %v1793_v7 = vpop.eup %1792  ;;  %1335 = vst.msk [vmem:[%s2337_s19 + $0xd0] sm:$0xff] %vm956_vm2, %v1298_v57 }
 0x336   : > { %v1795_v12 = vpop.eup %1794  ;;  %v1304_v49 = vmul.f32 %v1793_v7, %v2318_v22 }
 0x337   : > { %v1302_v16 = vmul.f32 %v1795_v12, %v2316_v18 }
 0x338   : > { %1338 = vst.msk [vmem:[%s2337_s19 + $0xe8] sm:$0xff] %vm956_vm2, %v1304_v49 }
 0x339   : > { %v1797_v50 = vpop.eup %1796  ;;  %1337 = vst.msk [vmem:[%s2337_s19 + $0xe0] sm:$0xff] %vm956_vm2, %v1302_v16 }
 0x33a   : > { %v1799_v15 = vpop.eup %1798  ;;  %v1308_v10 = vmul.f32 %v1797_v50, %v2326_v20 }
 0x33b   : > { %v1306_v53 = vmul.f32 %v1799_v15, %v2324_v26 }
 0x33c   : > { %1340 = vst.msk [vmem:[%s2337_s19 + $0xf8] sm:$0xff] %vm956_vm2, %v1308_v10 }
 0x33d   : > { %1339 = vst.msk [vmem:[%s2337_s19 + $0xf0] sm:$0xff] %vm956_vm2, %v1306_v53 }
 0x33e PF: > { %s15_s18 = sadd.s32 1, %s1806_s18  }
 0x33f   : > { %p12_p4 = scmp.ge.s32.totalorder %s15_s18, 6  }
 0x341   :  { %14 = sbr.rel (!%p12_p4) target bundleno = 1 (0x1), region = 70 }

</bundles_post_ra>
